<compile_context>
chip_gen: v6e
topology: v6e:2x2x1
jax: 0.10.0
libtpu: 0.0.40
codegen_flags: <defaults>
</compile_context>

<pallas_src>
import functools
import math

import numpy as np
import jax
import jax.numpy as jnp
from jax.experimental import pallas as pl
from jax.experimental.pallas import tpu as pltpu

_SUBLANE = 8            # float32 sublane tile height
_USE_TANH_GELU = False  # v5e: flip to route the transcendental to the EUP slot


def _gelu(x):
    if _USE_TANH_GELU:
        c = math.sqrt(2.0 / math.pi)
        return 0.5 * x * (1.0 + jnp.tanh(c * (x + 0.044715 * x * x * x)))
    # Exact (erf) GELU, matching torch.nn.GELU(approximate='none').
    return 0.5 * x * (1.0 + jax.lax.erf(x * (1.0 / math.sqrt(2.0))))


def _round_up(n, m):
    return ((n + m - 1) // m) * m


def _default_grid_steps(batch):
    """One grid step per TensorCore; remaining batch is folded into lanes."""
    try:
        kind = jax.devices()[0].device_kind.lower()
    except Exception:
        kind = ""
    # Megacore chips (two TensorCores behind one device): v4, v5p, v7x.
    cores = 2 if any(tag in kind for tag in ("v4", "v5p", "v7")) else 1
    g = max(1, min(batch, cores))
    while g > 1 and batch % g:
        g -= 1
    return g


# ---------------------------------------------------------------------------
# Fused conv branch: every 3x3 same-padding conv (+ the final conv) in ONE
# kernel.  In-kernel layout: (C, Bc*H*W) float32.  Each layer is one im2col
# MXU matmul (Cout_pad, 9*S) @ (9*S, Bc*H*W) fed from a persistent VMEM
# scratch filled with lane-masked rolled stores.
# ---------------------------------------------------------------------------
def _fused_conv_kernel(x_ref, *refs, H, W, Bc, cin_pads, tap_stride):
    o_ref, patches_ref = refs[-2], refs[-1]
    wb_refs = refs[:-2]
    n_layers = len(wb_refs) // 2
    HW = H * W
    HWB = Bc * HW
    S = tap_stride

    # Lane-validity masks, built once per grid step from iota (cached and
    # reused across all layers; only depends on the tap and the block height).
    coord_cache, mask_cache = {}, {}

    def coords(rows):
        if rows not in coord_cache:
            q = jax.lax.broadcasted_iota(jnp.int32, (rows, HWB), 1) % HW
            coord_cache[rows] = (q // W, q % W)
        return coord_cache[rows]

    def tap_mask(dy, dx, rows):
        key = (dy, dx, rows)
        if key not in mask_cache:
            yy, xx = coords(rows)
            conds = []
            if dy == 0:
                conds.append(yy >= 1)
            elif dy == 2:
                conds.append(yy <= H - 2)
            if dx == 0:
                conds.append(xx >= 1)
            elif dx == 2:
                conds.append(xx <= W - 2)
            m = conds[0]
            for c in conds[1:]:
                m = m & c
            mask_cache[key] = m
        return mask_cache[key]

    # Zero the im2col scratch once: lanes a tap masks off (outside-image
    # positions, identical for every layer) are never stored to, so they stay
    # zero for the whole kernel; rows beyond a layer's Cin_pad inside a tap
    # slot may hold stale data from a wider layer but hit zero weight columns.
    patches_ref[...] = jnp.zeros_like(patches_ref)

    x = x_ref[0]                                           # (cin_pads[0], HWB)
    for li in range(n_layers):
        cin_pad = cin_pads[li]
        w = wb_refs[2 * li][...]                           # (cout_pad, 9*S)
        b = wb_refs[2 * li + 1][...]                       # (cout_pad, 1)
        t = 0
        for dy in range(3):
            for dx in range(3):
                delta = (dy - 1) * W + (dx - 1)
                row0 = t * S
                if dy == 1 and dx == 1:
                    # centre tap: always valid, plain unmasked store
                    patches_ref[pl.ds(row0, cin_pad), :] = x
                else:
                    # roll(x, -delta)[p] == x[p + delta]; for valid taps the
                    # source stays inside the same image, wrap-around values
                    # land only on masked lanes (never written -> stay zero).
                    rolled = pltpu.roll(x, (-delta) % HWB, axis=1)
                    pltpu.store(patches_ref.at[pl.ds(row0, cin_pad), :],
                                rolled, mask=tap_mask(dy, dx, cin_pad))
                t += 1
        y = jnp.dot(w, patches_ref[...],
                    preferred_element_type=jnp.float32) + b
        if li < n_layers - 1:                              # GELU on all but final conv
            y = _gelu(y)
        x = y
    o_ref[0] = x                                           # (8, HWB), unmasked store


@functools.partial(jax.jit, static_argnames=("grid_steps",))
def _conv_branch(x_nchw, conv_params, grid_steps=1):
    """Runs the whole conv stack (GELU after every layer except the last)."""
    B, C0, H, W = x_nchw.shape
    assert B % grid_steps == 0, (B, grid_steps)
    g = grid_steps
    Bc = B // g
    HW = H * W
    HWB = Bc * HW

    # NCHW -> (g, C, Bc*HW): batch chunk folded into the lane axis; pad the
    # channel dim once to a sublane multiple so every in-kernel block is
    # (8,128)-tile aligned.
    x2d = x_nchw.astype(jnp.float32).reshape(g, Bc, C0, HW)
    x2d = jnp.transpose(x2d, (0, 2, 1, 3)).reshape(g, C0, HWB)
    c0_pad = _round_up(C0, _SUBLANE)
    if c0_pad != C0:
        x2d = jnp.pad(x2d, ((0, 0), (0, c0_pad - C0), (0, 0)))

    # Padded channel bookkeeping.  The final conv's Cout is padded 2 -> 8 too,
    # so the output store is unmasked; the wrapper slices the real channels.
    cin_pads, cout_pads = [], []
    cur = c0_pad
    for (w, _) in conv_params:
        _, _, cin, cout = w.shape
        assert cin <= cur
        cin_pads.append(cur)
        cur = _round_up(cout, _SUBLANE)
        cout_pads.append(cur)
    S = max(cin_pads)                    # fixed tap stride shared by all layers

    # Pack each conv layer into im2col form with the fixed stride:
    # w_mat[co, t*S + ci] = w[dy, dx, ci, co]  (zeros for padded ci/co rows).
    packed = []
    for (w, bias), cout_pad in zip(conv_params, cout_pads):
        _, _, cin, cout = w.shape
        w9 = jnp.zeros((9, S, cout_pad), jnp.float32)
        w9 = w9.at[:, :cin, :cout].set(w.astype(jnp.float32).reshape(9, cin, cout))
        w_mat = jnp.transpose(w9, (2, 0, 1)).reshape(cout_pad, 9 * S)
        b_col = jnp.zeros((cout_pad, 1), jnp.float32).at[:cout, 0].set(
            bias.astype(jnp.float32))
        packed.append((w_mat, b_col))

    flat_wb = []
    in_specs = [pl.BlockSpec((1, c0_pad, HWB), lambda i: (i, 0, 0))]
    for w_mat, b_col in packed:
        flat_wb += [w_mat, b_col]
        # Constant index maps: each weight/bias block is fetched once and
        # revisited across the (<=2-step) grid; extra buffering is moot here.
        in_specs.append(pl.BlockSpec(w_mat.shape, lambda i: (0, 0)))
        in_specs.append(pl.BlockSpec(b_col.shape, lambda i: (0, 0)))

    cout_pad_last = cout_pads[-1]
    out2d = pl.pallas_call(
        functools.partial(_fused_conv_kernel, H=H, W=W, Bc=Bc,
                          cin_pads=tuple(cin_pads), tap_stride=S),
        out_shape=jax.ShapeDtypeStruct((g, cout_pad_last, HWB), jnp.float32),
        grid=(g,),
        in_specs=in_specs,
        out_specs=pl.BlockSpec((1, cout_pad_last, HWB), lambda i: (i, 0, 0)),
        scratch_shapes=[pltpu.VMEM((9 * S, HWB), jnp.float32)],
        compiler_params=pltpu.CompilerParams(
            # one grid step per TensorCore -> both cores busy on megacore chips
            # TODO(synk): verify in a trace the 2-step grid really shards on v7x.
            dimension_semantics=("parallel",),
            vmem_limit_bytes=32 * 1024 * 1024,
        ),
    )(x2d, *flat_wb)

    cout_real = conv_params[-1][0].shape[-1]
    out = out2d.reshape(g, cout_pad_last, Bc, HW)
    out = jnp.transpose(out, (0, 2, 1, 3)).reshape(B, cout_pad_last, H, W)
    return out[:, :cout_real]


# ---------------------------------------------------------------------------
# Fused dense (latent) branch: the whole Linear+GELU chain in ONE pallas_call.
# (Dead compute in the reference forward - kept only behind a flag.)
# ---------------------------------------------------------------------------
def _dense_chain_kernel(x_ref, *refs):
    o_ref = refs[-1]
    wb_refs = refs[:-1]
    z = x_ref[...]
    for li in range(len(wb_refs) // 2):
        w = wb_refs[2 * li][...]
        b = wb_refs[2 * li + 1][...]
        z = _gelu(jnp.dot(z, w, preferred_element_type=jnp.float32) + b)
    o_ref[...] = z


@jax.jit
def dense_chain(x, layers):
    d_out = layers[-1][0].shape[1]
    flat = []
    for w, bias in layers:
        flat += [w.astype(jnp.float32), bias.reshape(1, -1).astype(jnp.float32)]
    # No grid: the whole (tiny) problem maps into VMEM in a single invocation.
    return pl.pallas_call(
        _dense_chain_kernel,
        out_shape=jax.ShapeDtypeStruct((x.shape[0], d_out), jnp.float32),
    )(x.astype(jnp.float32), *flat)


# ---------------------------------------------------------------------------
# Parameter construction (deterministic, PyTorch-default-style uniform init)
# ---------------------------------------------------------------------------
def init_params(key, latent_dim, num_dense_neurons, num_channels):
    num_upsample_channels = list(num_channels[::-1])
    keys = iter(jax.random.split(key, 64))

    def lin(din, dout):
        k1, k2 = next(keys), next(keys)
        s = 1.0 / math.sqrt(din)
        return (jax.random.uniform(k1, (din, dout), jnp.float32, -s, s),
                jax.random.uniform(k2, (dout,), jnp.float32, -s, s))

    def conv(cin, cout):
        k1, k2 = next(keys), next(keys)
        s = 1.0 / math.sqrt(cin * 9)
        # weights stored HWIO (equivalent to PyTorch OIHW transposed)
        return (jax.random.uniform(k1, (3, 3, cin, cout), jnp.float32, -s, s),
                jax.random.uniform(k2, (cout,), jnp.float32, -s, s))

    params = {}
    dense_sizes = [latent_dim] + list(num_dense_neurons)
    params['dense'] = [lin(dense_sizes[i], dense_sizes[i + 1])
                       for i in range(len(num_dense_neurons))]
    params['final_dense'] = lin(num_dense_neurons[-1], num_channels[0] * 2 * 2)

    down_sizes = [3] + num_upsample_channels
    params['down'] = [conv(down_sizes[i], down_sizes[i + 1])
                      for i in range(len(num_upsample_channels))]
    up_sizes = [num_channels[0]] + list(num_channels)
    params['up'] = [conv(up_sizes[i], up_sizes[i + 1])
                    for i in range(len(num_channels))]
    params['final_conv'] = conv(num_channels[-1], 2)
    return params


# ---------------------------------------------------------------------------
# Forward pass (mirrors the reference forward)
# ---------------------------------------------------------------------------
def generator_forward(params, latent_samples, input_data, num_channels,
                      *, compute_dead_dense_branch=False, grid_steps=None):
    # Dense branch: in the reference PyTorch forward its result is immediately
    # overwritten, i.e. it is dead compute.  Skipped by default; when enabled
    # it runs as a single fused pallas_call (output identical either way).
    if compute_dead_dense_branch:
        z = dense_chain(latent_samples,
                        params['dense'] + [params['final_dense']])
        z = z.reshape(-1, num_channels[0], 2, 2)  # discarded, as in reference
        del z

    conv_layers = params['down'] + params['up'] + [params['final_conv']]
    if grid_steps is None:
        grid_steps = _default_grid_steps(input_data.shape[0])
    return _conv_branch(input_data, conv_layers, grid_steps=grid_steps)


# Pure-JAX reference (sanity check of the Pallas kernels).
def _ref_conv(x_nhwc, w, b, act):
    y = jax.lax.conv_general_dilated(
        x_nhwc, w, (1, 1), 'SAME',
        dimension_numbers=('NHWC', 'HWIO', 'NHWC')) + b
    return _gelu(y) if act else y


def reference_forward(params, input_data):
    x = jnp.transpose(input_data, (0, 2, 3, 1))
    for w, b in params['down']:
        x = _ref_conv(x, w, b, True)
    for w, b in params['up']:
        x = _ref_conv(x, w, b, True)
    w, b = params['final_conv']
    x = _ref_conv(x, w, b, False)
    return jnp.transpose(x, (0, 3, 1, 2))


if __name__ == "__main__":
    latent_dim = 8
    num_dense_neurons = [32, 32]
    num_channels = [8, 16]
    B, Hs, Ws = 2, 16, 16

    key = jax.random.PRNGKey(0)
    kp, kl, kx = jax.random.split(key, 3)
    params = init_params(kp, latent_dim, num_dense_neurons, num_channels)
    latent = jax.random.normal(kl, (B, latent_dim), jnp.float32)
    input_data = jax.random.normal(kx, (B, 3, Hs, Ws), jnp.float32)

    out = generator_forward(params, latent, input_data, num_channels,
                            compute_dead_dense_branch=True)
    out = jax.block_until_ready(out)
    assert out.shape == (B, 2, Hs, Ws), out.shape

    # Fused conv kernel vs. pure-JAX lax.conv reference (relative tolerance so
    # the check is robust to the default TPU matmul precision on both sides).
    ref = jax.block_until_ready(reference_forward(params, input_data))
    ref_scale = float(jnp.max(jnp.abs(ref))) + 1e-6
    conv_err = float(jnp.max(jnp.abs(out - ref))) / ref_scale
    assert conv_err < 5e-2, f"conv branch mismatch vs reference: {conv_err}"

    # Fused dense-chain kernel vs. pure-JAX reference (same default precision).
    z_k = jax.block_until_ready(
        dense_chain(latent, params['dense'] + [params['final_dense']]))
    z_ref = latent
    for w, b in params['dense'] + [params['final_dense']]:
        z_ref = _gelu(jnp.dot(z_ref, w) + b)
    z_scale = float(jnp.max(jnp.abs(z_ref))) + 1e-6
    dense_err = float(jnp.max(jnp.abs(z_k - z_ref))) / z_scale
    assert dense_err < 5e-2, f"dense chain mismatch vs reference: {dense_err}"

    print("KERNEL_OK")
</pallas_src>

<mosaic_0001>
module attributes {stable_mosaic.version = 11 : i64} {
  func.func @_dense_chain_kernel(%arg0: memref<2x8xf32, #tpu.memory_space<vmem>>, %arg1: memref<8x32xf32, #tpu.memory_space<vmem>>, %arg2: memref<1x32xf32, #tpu.memory_space<vmem>>, %arg3: memref<32x32xf32, #tpu.memory_space<vmem>>, %arg4: memref<1x32xf32, #tpu.memory_space<vmem>>, %arg5: memref<32x32xf32, #tpu.memory_space<vmem>>, %arg6: memref<1x32xf32, #tpu.memory_space<vmem>>, %arg7: memref<2x32xf32, #tpu.memory_space<vmem>>) attributes {dimension_semantics = [], scalar_prefetch = 0 : i64, scratch_operands = 0 : i64, tpu.core_type = #tpu.core_type<tc>} {
    %c0 = arith.constant 0 : index
    %c0_0 = arith.constant 0 : index
    %0 = vector.load %arg0[%c0, %c0_0] : memref<2x8xf32, #tpu.memory_space<vmem>>, vector<2x8xf32>
    %c0_1 = arith.constant 0 : index
    %c0_2 = arith.constant 0 : index
    %1 = vector.load %arg1[%c0_1, %c0_2] : memref<8x32xf32, #tpu.memory_space<vmem>>, vector<8x32xf32>
    %c0_3 = arith.constant 0 : index
    %c0_4 = arith.constant 0 : index
    %2 = vector.load %arg2[%c0_3, %c0_4] : memref<1x32xf32, #tpu.memory_space<vmem>>, vector<1x32xf32>
    %cst = arith.constant dense<0.000000e+00> : vector<2x32xf32>
    %3 = tpu.matmul %0, %1, %cst {dimension_numbers = #tpu.dot_dimension_numbers<[1], [0], [0], [1], [0, 0, 1, 1], [], []>} : vector<2x8xf32>, vector<8x32xf32>, vector<2x32xf32> -> vector<2x32xf32>
    %4 = vector.broadcast %2 : vector<1x32xf32> to vector<2x32xf32>
    %5 = arith.addf %3, %4 : vector<2x32xf32>
    %cst_5 = arith.constant 5.000000e-01 : f32
    %6 = vector.broadcast %cst_5 : f32 to vector<2x32xf32>
    %7 = arith.mulf %6, %5 : vector<2x32xf32>
    %cst_6 = arith.constant 0.707106769 : f32
    %8 = vector.broadcast %cst_6 : f32 to vector<2x32xf32>
    %9 = arith.mulf %5, %8 : vector<2x32xf32>
    %10 = math.erf %9 : vector<2x32xf32>
    %cst_7 = arith.constant 1.000000e+00 : f32
    %11 = vector.broadcast %cst_7 : f32 to vector<2x32xf32>
    %12 = arith.addf %11, %10 : vector<2x32xf32>
    %13 = arith.mulf %7, %12 : vector<2x32xf32>
    %c0_8 = arith.constant 0 : index
    %c0_9 = arith.constant 0 : index
    %14 = vector.load %arg3[%c0_8, %c0_9] : memref<32x32xf32, #tpu.memory_space<vmem>>, vector<32x32xf32>
    %c0_10 = arith.constant 0 : index
    %c0_11 = arith.constant 0 : index
    %15 = vector.load %arg4[%c0_10, %c0_11] : memref<1x32xf32, #tpu.memory_space<vmem>>, vector<1x32xf32>
    %cst_12 = arith.constant dense<0.000000e+00> : vector<2x32xf32>
    %16 = tpu.matmul %13, %14, %cst_12 {dimension_numbers = #tpu.dot_dimension_numbers<[1], [0], [0], [1], [0, 0, 1, 1], [], []>} : vector<2x32xf32>, vector<32x32xf32>, vector<2x32xf32> -> vector<2x32xf32>
    %17 = vector.broadcast %15 : vector<1x32xf32> to vector<2x32xf32>
    %18 = arith.addf %16, %17 : vector<2x32xf32>
    %cst_13 = arith.constant 5.000000e-01 : f32
    %19 = vector.broadcast %cst_13 : f32 to vector<2x32xf32>
    %20 = arith.mulf %19, %18 : vector<2x32xf32>
    %cst_14 = arith.constant 0.707106769 : f32
    %21 = vector.broadcast %cst_14 : f32 to vector<2x32xf32>
    %22 = arith.mulf %18, %21 : vector<2x32xf32>
    %23 = math.erf %22 : vector<2x32xf32>
    %cst_15 = arith.constant 1.000000e+00 : f32
    %24 = vector.broadcast %cst_15 : f32 to vector<2x32xf32>
    %25 = arith.addf %24, %23 : vector<2x32xf32>
    %26 = arith.mulf %20, %25 : vector<2x32xf32>
    %c0_16 = arith.constant 0 : index
    %c0_17 = arith.constant 0 : index
    %27 = vector.load %arg5[%c0_16, %c0_17] : memref<32x32xf32, #tpu.memory_space<vmem>>, vector<32x32xf32>
    %c0_18 = arith.constant 0 : index
    %c0_19 = arith.constant 0 : index
    %28 = vector.load %arg6[%c0_18, %c0_19] : memref<1x32xf32, #tpu.memory_space<vmem>>, vector<1x32xf32>
    %cst_20 = arith.constant dense<0.000000e+00> : vector<2x32xf32>
    %29 = tpu.matmul %26, %27, %cst_20 {dimension_numbers = #tpu.dot_dimension_numbers<[1], [0], [0], [1], [0, 0, 1, 1], [], []>} : vector<2x32xf32>, vector<32x32xf32>, vector<2x32xf32> -> vector<2x32xf32>
    %30 = vector.broadcast %28 : vector<1x32xf32> to vector<2x32xf32>
    %31 = arith.addf %29, %30 : vector<2x32xf32>
    %cst_21 = arith.constant 5.000000e-01 : f32
    %32 = vector.broadcast %cst_21 : f32 to vector<2x32xf32>
    %33 = arith.mulf %32, %31 : vector<2x32xf32>
    %cst_22 = arith.constant 0.707106769 : f32
    %34 = vector.broadcast %cst_22 : f32 to vector<2x32xf32>
    %35 = arith.mulf %31, %34 : vector<2x32xf32>
    %36 = math.erf %35 : vector<2x32xf32>
    %cst_23 = arith.constant 1.000000e+00 : f32
    %37 = vector.broadcast %cst_23 : f32 to vector<2x32xf32>
    %38 = arith.addf %37, %36 : vector<2x32xf32>
    %39 = arith.mulf %33, %38 : vector<2x32xf32>
    %c0_24 = arith.constant 0 : index
    %c0_25 = arith.constant 0 : index
    %40 = vector.load %arg7[%c0_24, %c0_25] : memref<2x32xf32, #tpu.memory_space<vmem>>, vector<2x32xf32>
    tpu.vector_store %arg7[%c0_24, %c0_25], %39 {strides = array<i32>} : memref<2x32xf32, #tpu.memory_space<vmem>>, vector<2x32xf32>,
    return
  }
}

</mosaic_0001>

<bundles_post_ra>
// kernel: dense_chain.1
= control target key start
LH: loop header
LB: loop body
LE: loop exit
PB: predicated region body
PF: predicated region fallthrough
CT: control target
= control target key end

     0   :  { %12 = vsyncpa [#allocation3], 0  ;;  %s570_s0 = inlined_call_operand.vmem [shape: f32[2,8], index: 0, kind: input, shape index: {}]   ;;  %s571_s1 = inlined_call_operand.hbm [shape: f32[8,32], index: 1, kind: input, shape index: {}]   ;;  %s572_s2 = inlined_call_operand.vmem [shape: f32[1,32], index: 2, kind: input, shape index: {}]   ;;  %s573_s3 = inlined_call_operand.hbm [shape: f32[32,32], index: 3, kind: input, shape index: {}]   ;;  %s574_s4 = inlined_call_operand.vmem [shape: f32[1,32], index: 4, kind: input, shape index: {}]   ;;  %s575_s5 = inlined_call_operand.hbm [shape: f32[32,32], index: 5, kind: input, shape index: {}]   ;;  %s576_s6 = inlined_call_operand.vmem [shape: f32[1,32], index: 6, kind: input, shape index: {}]   ;;  %s577_s7 = inlined_call_operand.hbm [shape: f32[2,32], index: 7, kind: output, shape index: {}]  }
   0x1   :  { %13 = vsyncpa [#allocation6], 0 }
   0x2   :  { %14 = vsyncpa [#allocation4], 0  ;;  %s496_s24 = smov [#allocation5]  }
   0x3   :  { %s34_s25 = sshll.u32 %s496_s24, 4  ;;  %s35_s25 = int_to_ptr.vmem [resolvable:$true] %s34_s25 }
   0x4   :  { %s418_s26 = scalar_lea.vmem %s35_s25, 512  ;;  %p423_p1 = scmp.lt.s32.totalorder %s35_s25, %s35_s25 }
   0x5   :  { %p419_p0 = scmp.ne.s32.totalorder %s35_s25, %s418_s26  ;;  %p424_p2 = scmp.lt.s32.totalorder %s418_s26, %s418_s26 }
   0x7   :  { %p425_p3 = por %p424_p2, %p423_p1 }
   0x9   :  { %p426_p4 = pnand %p425_p3, %p419_p0 }
   0xb   :  { %429 = shalt.err (!%p426_p4)
}
   0xc   :  { %s497_s27 = smov 128   ;;  %s498_s28 = smov 8  }
   0xd   :  { %40 = dma.hbm_to_vmem [thread:$0]  %s573_s3, 512, %s35_s25, [#allocation6], %s497_s27, %s497_s27, %s498_s28  }
   0xe   :  { %s499_s8 = smov [#allocation2]   ;;  %s500_s10 = smov [#allocation7]  }
   0xf   :  { %s23_s9 = sshll.u32 %s499_s8, 4  ;;  %s48_s11 = sshll.u32 %s500_s10, 4  ;;  %s24_s9 = int_to_ptr.vmem [resolvable:$true] %s23_s9  ;;  %s49_s11 = int_to_ptr.vmem [resolvable:$true] %s48_s11 }
  0x10   :  { %s438_s12 = scalar_lea.vmem %s24_s9, 128  ;;  %p443_p6 = scmp.lt.s32.totalorder %s24_s9, %s24_s9 }
  0x11   :  { %p439_p5 = scmp.ne.s32.totalorder %s24_s9, %s438_s12  ;;  %p444_p7 = scmp.lt.s32.totalorder %s438_s12, %s438_s12 }
  0x13   :  { %p445_p8 = por %p444_p7, %p443_p6 }
  0x15   :  { %p446_p9 = pnand %p445_p8, %p439_p5 }
  0x17   :  { %449 = shalt.err (!%p446_p9)
}
  0x18   :  { %26 = dma.hbm_to_vmem [thread:$0]  %s571_s1, 128, %s24_s9, [#allocation3]  }
  0x19   :  { %s458_s15 = scalar_lea.vmem %s49_s11, 512  ;;  %p463_p11 = scmp.lt.s32.totalorder %s49_s11, %s49_s11 }
  0x1a   :  { %p459_p10 = scmp.ne.s32.totalorder %s49_s11, %s458_s15  ;;  %p464_p12 = scmp.lt.s32.totalorder %s458_s15, %s458_s15 }
  0x1c   :  { %p465_p13 = por %p464_p12, %p463_p11 }
  0x1e   :  { %p466_p0 = pnand %p465_p13, %p459_p10 }
  0x20   :  { %469 = shalt.err (!%p466_p0)
}
  0x21   :  { %54 = dma.hbm_to_vmem [thread:$0]  %s575_s5, 512, %s49_s11, [#allocation6], %s497_s27, %s497_s27, %s498_s28  }
  0x22   :  { %490 = dma.done.wait [#allocation3], 128  }
  0x23   :  { %491 = vsyncadd [#allocation3], 4294967168 }
  0x24   :  { %492 = dma.done.wait [#allocation6], 1024  }
  0x25   :  { %493 = vsyncadd [#allocation6], 4294966272  ;;  %v501_v0 = vmov 0.0   ;;  %vm502_vm0 = vmmov 0   ;;  %vm75_vm1 = vcmask 64512   ;;  %v67_v1 = vld [vmem:[#allocation2] sm:$0xff] }
  0x26   :  { %369 = vmatprep.subr.mxu0 %v501_v0  ;;  %371 = vmatprep.mubr.msk.f32.mxu0 %vm502_vm0, %v501_v0  ;;  %v66_v2 = vld [vmem:[%s570_s0] sm:$0x3]  ;;  %v156_v4 = vld [vmem:[#allocation5 + $0x10] sm:$0xff]  ;;  %v155_v5 = vld [vmem:[#allocation5 + $0x8] sm:$0xff]  ;;  %vm165_vm2 = vcmask 261120   ;;  %vm333_vm3 = vcmask 254976  }
  0x27   :  { %374 = vmatprep.subr.mxu1 %v501_v0  ;;  %382 = vmatprep.mubr.msk.f32.mxu1 %vm502_vm0, %v501_v0  ;;  %v157_v3 = vld [vmem:[#allocation5 + $0x18] sm:$0xff]  ;;  %v154_v6 = vld [vmem:[#allocation5] sm:$0xff]  ;;  %v246_v17 = vld [vmem:[#allocation7 + $0x10] sm:$0xff] }
  0x28   :  { %370 = vmatpush3.msra.mxu0 %v67_v1  ;;  %375 = vmatpush3.msra.mxu1 %v157_v3  ;;  %v351_v7 = vld [vmem:[%s572_s2] ss:$0 sm:$0xff]  ;;  %v245_v18 = vld [vmem:[#allocation7 + $0x8] sm:$0xff]  ;;  %v244_v19 = vld [vmem:[#allocation7] sm:$0xff] }
  0x29   :  { %372 = vmatmul.mubr.msk.f32.vlgmr.msra.gmra.mxu0 %vm75_vm1, %v66_v2  ;;  %385 = vmatprep.subr.mxu0 %v501_v0  ;;  %v247_v16 = vld [vmem:[#allocation7 + $0x18] sm:$0xff] }
  0x2a   :  { %393 = vmatprep.mubr.msk.f32.mxu0 %vm502_vm0, %v501_v0  ;;  %376 = vmatprep.subr.mxu1 %v501_v0  ;;  %v353_v20 = vld [vmem:[%s574_s4] ss:$0 sm:$0xff]  ;;  %s503_s4 = smov [#allocation8]  }
  0x2b   :  { %377 = vmatpush3.msra.mxu1 %v156_v4  ;;  %386 = vmatpush3.msra.mxu0 %v247_v16  ;;  %v355_v29 = vld [vmem:[%s576_s6] ss:$0 sm:$0xff]  ;;  %s341_s21 = sshll.u32 %s503_s4, 4  ;;  %s342_s21 = int_to_ptr.vmem [resolvable:$true] %s341_s21 }
  0x2c   :  { %378 = vmatprep.subr.mxu1 %v501_v0  ;;  %387 = vmatprep.subr.mxu0 %v501_v0  ;;  %s470_s22 = scalar_lea.vmem %s342_s21, 32  ;;  %p475_p2 = scmp.lt.s32.totalorder %s342_s21, %s342_s21 }
  0x2d   :  { %379 = vmatpush3.msra.mxu1 %v155_v5  ;;  %388 = vmatpush3.msra.mxu0 %v246_v17  ;;  %p471_p1 = scmp.ne.s32.totalorder %s342_s21, %s470_s22  ;;  %p476_p3 = scmp.lt.s32.totalorder %s470_s22, %s470_s22 }
  0x2e   :  { %380 = vmatprep.subr.mxu1 %v501_v0  ;;  %389 = vmatprep.subr.mxu0 %v501_v0 }
  0x2f   :  { %381 = vmatpush3.msra.mxu1 %v154_v6  ;;  %390 = vmatpush3.msra.mxu0 %v245_v18  ;;  %p477_p4 = por %p476_p3, %p475_p2 }
  0x30   :  { %391 = vmatprep.subr.mxu0 %v501_v0 }
  0x31   :  { %392 = vmatpush3.msra.mxu0 %v244_v19  ;;  %p478_p5 = pnand %p477_p4, %p471_p1 }
  0xe9   :  { %v145_v8 = vpop.f32.mrf.mxu0 }
  0xea   :  { %v146_v9 = vadd.f32 %v351_v7, %v145_v8 }
  0xeb   :  { %v373_v10 = vpop.f32.mrf.mxu0 }
  0xec   :  { %v150_v11 = vmul.f32 0.70710677, %v146_v9  ;;  %v149_v13 = vmul.f32 0.5, %v146_v9 }
  0xee   :  { %404 = verf.f32 %v150_v11 }
  0xfb   :  { %v405_v12 = vpop.eup %404 }
  0xfc   :  { %v152_v14 = vadd.f32 1.0, %v405_v12 }
  0xfe   :  { %v153_v15 = vmul.f32 %v152_v14, %v149_v13 }
 0x100   :  { %383 = vmatmul.mubr.msk.f32.vlgmr.msra.gmra.mxu1 %vm165_vm2, %v153_v15 }
 0x1c0   :  { %v235_v21 = vpop.f32.mrf.mxu1 }
 0x1c1   :  { %v236_v22 = vadd.f32 %v353_v20, %v235_v21 }
 0x1c2   :  { %v384_v23 = vpop.f32.mrf.mxu1 }
 0x1c3   :  { %v240_v24 = vmul.f32 0.70710677, %v236_v22  ;;  %v239_v26 = vmul.f32 0.5, %v236_v22 }
 0x1c5   :  { %406 = verf.f32 %v240_v24 }
 0x1d2   :  { %v407_v25 = vpop.eup %406 }
 0x1d3   :  { %v242_v27 = vadd.f32 1.0, %v407_v25 }
 0x1d5   :  { %v243_v28 = vmul.f32 %v242_v27, %v239_v26 }
 0x1d7   :  { %394 = vmatmul.mubr.msk.f32.vlgmr.msra.gmra.mxu0 %vm165_vm2, %v243_v28 }
 0x297   :  { %v324_v30 = vpop.f32.mrf.mxu0 }
 0x298   :  { %v325_v31 = vadd.f32 %v355_v29, %v324_v30 }
 0x299   :  { %v395_v32 = vpop.f32.mrf.mxu0 }
 0x29a   :  { %v329_v33 = vmul.f32 0.70710677, %v325_v31  ;;  %v328_v35 = vmul.f32 0.5, %v325_v31 }
 0x29c   :  { %408 = verf.f32 %v329_v33 }
 0x2a9   :  { %v409_v34 = vpop.eup %408 }
 0x2aa   :  { %v331_v36 = vadd.f32 1.0, %v409_v34 }
 0x2ac   :  { %v332_v37 = vmul.f32 %v331_v36, %v328_v35 }
 0x2ae   :  { %334 = vst.msk [vmem:[#allocation8] sm:$0x3] %vm333_vm3, %v332_v37 }
 0x2af   :  { %481 = shalt.err (!%p478_p5)
}
 0x2b0   :  { %344 = dma.vmem_to_hbm [thread:$0]  %s342_s21, 32, %s577_s7, [#allocation4]  }
 0x2b1   :  { %494 = dma.done.wait [#allocation4], 32  }
 0x2b2   :  { %495 = vsyncadd [#allocation4], 4294967264 }
 0x2b3   :  { %348 = vsyncpa [#allocation3], 1 }
 0x2b4   :  { %349 = vsyncpa [#allocation6], 1 }
 0x2b5   :  { %350 = vsyncpa [#allocation4], 1 }

</bundles_post_ra>
